<compile_context>
chip_gen: v7x
topology: tpu7x:2x2x1
jax: 0.10.0
libtpu: 0.0.40
codegen_flags: <defaults>
</compile_context>

<pallas_src>
import functools
import math

import jax
import jax.numpy as jnp
from jax import lax
from jax.experimental import pallas as pl
from jax.experimental.pallas import tpu as pltpu

_MIB = 1024 * 1024


def _round_up(x, m):
    return ((x + m - 1) // m) * m


def _cdiv(a, b):
    return (a + b - 1) // b


# -----------------------------------------------------------------------------
# Generation-aware budgets (derived once from this chip's VMEM capacity).
# -----------------------------------------------------------------------------
_BUDGET_CACHE = None


def _budget():
    """Returns (block_target_bytes, vmem_limit_bytes)."""
    global _BUDGET_CACHE
    if _BUDGET_CACHE is None:
        try:
            cap = int(pltpu.get_tpu_info().vmem_capacity_bytes)
        except Exception:
            cap = 64 * _MIB  # conservative fallback: v7x per-TC VMEM
        cap = max(cap, 32 * _MIB)
        # 2x in + 2x out double buffers + f32 widening temps fit comfortably:
        # ~4 MiB blocks / 48 MiB limit on v7x, ~8 MiB / 96 MiB on v5e/v6e.
        target_bytes = min(cap // 16, 8 * _MIB)
        vmem_limit = min((cap * 3) // 4, 96 * _MIB)
        _BUDGET_CACHE = (target_bytes, vmem_limit)
    return _BUDGET_CACHE


# -----------------------------------------------------------------------------
# Kernels (all: f32 widening in-vreg, rsqrt(max(sumsq, eps^2)) == 1/max(||x||,eps))
# -----------------------------------------------------------------------------
def _row_kernel(x_ref, o_ref, *, eps):
    # Block (TM, D): norm axis on lanes. Lane reduce -> XLU, rsqrt -> EUP.
    x = x_ref[...].astype(jnp.float32)
    ssq = jnp.sum(x * x, axis=-1, keepdims=True)           # (TM, 1)
    inv = lax.rsqrt(jnp.maximum(ssq, eps * eps))
    o_ref[...] = (x * inv).astype(o_ref.dtype)


def _seg_row_kernel(x_ref, seg_ref, o_ref, *, eps):
    # Block (TM, 128): each row packs k = 128 // D consecutive length-D vectors.
    # seg_ref is the (128, 128) block-diagonal 0/1 matrix that sums each D-lane
    # segment and broadcasts the sum back to its lanes. It rides the otherwise
    # idle MXU; a bf16 hi/lo (Dekker-style) split keeps ~f32 accuracy while
    # staying on the fast bf16 matmul path.
    x = x_ref[...].astype(jnp.float32)
    sq = x * x
    hi = sq.astype(jnp.bfloat16)
    lo = (sq - hi.astype(jnp.float32)).astype(jnp.bfloat16)
    seg = seg_ref[...]
    ssq = (jnp.dot(hi, seg, preferred_element_type=jnp.float32)
           + jnp.dot(lo, seg, preferred_element_type=jnp.float32))
    inv = lax.rsqrt(jnp.maximum(ssq, eps * eps))
    o_ref[...] = (x * inv).astype(o_ref.dtype)


def _mid_kernel(x_ref, o_ref, *, eps):
    # Block (TP, D, TN): norm axis on sublanes, lane-dense loads/stores.
    x = x_ref[...].astype(jnp.float32)
    ssq = jnp.sum(x * x, axis=1, keepdims=True)             # (TP, 1, TN)
    inv = lax.rsqrt(jnp.maximum(ssq, eps * eps))
    o_ref[...] = (x * inv).astype(o_ref.dtype)


# -----------------------------------------------------------------------------
# Tile selection (byte-based, megacore-balanced)
# -----------------------------------------------------------------------------
def _pick_row_tile(n, d, itemsize, target_bytes):
    gran = max(8, 32 // itemsize)                           # 8 f32 / 16 bf16 / 32 i8
    rows = max(target_bytes // (itemsize * max(d, 1)), gran)
    rows = min(rows, _round_up(n, gran))
    tm = max(gran, (rows // gran) * gran)
    nb = _cdiv(n, tm)
    if nb == 1 and n > 2 * gran:
        # Split a single block in two so v7x's 2 TCs both get work
        # (one extra ~0.35us step on single-TC chips: negligible).
        tm = max(gran, _round_up(_cdiv(n, 2), gran))
    elif 2 <= nb <= 7 and nb % 2 == 1:
        # Prefer an even block count (2:1 imbalance on v7x otherwise).
        tm2 = max(gran, _round_up(_cdiv(n, nb + 1), gran))
        if _cdiv(n, tm2) % 2 == 0:
            tm = tm2
    return tm


def _pick_mid_tiles(pre, d, post, itemsize, target_bytes):
    elems = max(target_bytes // itemsize, 8 * 128)
    if post <= 128:
        tn = post                                            # full dim (allowed)
    else:
        budget_lanes = max(128, elems // max(d, 1))
        if post <= budget_lanes:
            tn = post                                        # full dim (allowed)
        else:
            tn = max(128, (budget_lanes // 128) * 128)
            tn = min(tn, (post // 128) * 128)                # never exceed post
    tp = max(1, elems // (max(d, 1) * max(tn, 1)))
    tp = min(tp, pre)
    nb = _cdiv(pre, tp)
    if 2 <= nb <= 7 and nb % 2 == 1:
        tp2 = max(1, _cdiv(pre, nb + 1))
        if _cdiv(pre, tp2) % 2 == 0:
            tp = tp2
    return tp, tn


# -----------------------------------------------------------------------------
# pallas_call wrappers
# -----------------------------------------------------------------------------
def _call_rows(x2, eps, target_bytes, vmem_limit):
    n, d = x2.shape
    itemsize = jnp.dtype(x2.dtype).itemsize
    tm = _pick_row_tile(n, d, itemsize, target_bytes)
    return pl.pallas_call(
        functools.partial(_row_kernel, eps=eps),
        out_shape=jax.ShapeDtypeStruct((n, d), x2.dtype),
        grid_spec=pltpu.PrefetchScalarGridSpec(
            num_scalar_prefetch=0,
            grid=(_cdiv(n, tm),),
            in_specs=[pl.BlockSpec((tm, d), lambda i: (i, 0))],
            out_specs=pl.BlockSpec((tm, d), lambda i: (i, 0)),
        ),
        compiler_params=pltpu.CompilerParams(
            dimension_semantics=("parallel",),
            vmem_limit_bytes=vmem_limit,
        ),
    )(x2)


def _call_seg_rows(x2, d, eps, target_bytes, vmem_limit):
    # x2: (N2, 128), every row holds k = 128 // d consecutive length-d vectors.
    n2, lanes = x2.shape
    itemsize = jnp.dtype(x2.dtype).itemsize
    tm = _pick_row_tile(n2, lanes, itemsize, target_bytes)
    lane_seg = jnp.arange(lanes, dtype=jnp.int32) // d
    seg = (lane_seg[:, None] == lane_seg[None, :]).astype(jnp.bfloat16)
    return pl.pallas_call(
        functools.partial(_seg_row_kernel, eps=eps),
        out_shape=jax.ShapeDtypeStruct((n2, lanes), x2.dtype),
        grid_spec=pltpu.PrefetchScalarGridSpec(
            num_scalar_prefetch=0,
            grid=(_cdiv(n2, tm),),
            in_specs=[pl.BlockSpec((tm, lanes), lambda i: (i, 0)),
                      pl.BlockSpec((lanes, lanes), lambda i: (0, 0))],
            out_specs=pl.BlockSpec((tm, lanes), lambda i: (i, 0)),
        ),
        compiler_params=pltpu.CompilerParams(
            dimension_semantics=("parallel",),
            vmem_limit_bytes=vmem_limit,
        ),
    )(x2, seg)


def _call_mid(x3, eps, target_bytes, vmem_limit):
    pre, d, post = x3.shape
    itemsize = jnp.dtype(x3.dtype).itemsize
    tp, tn = _pick_mid_tiles(pre, d, post, itemsize, target_bytes)
    return pl.pallas_call(
        functools.partial(_mid_kernel, eps=eps),
        out_shape=jax.ShapeDtypeStruct((pre, d, post), x3.dtype),
        grid_spec=pltpu.PrefetchScalarGridSpec(
            num_scalar_prefetch=0,
            grid=(_cdiv(pre, tp), _cdiv(post, tn)),
            in_specs=[pl.BlockSpec((tp, d, tn), lambda i, j: (i, 0, j))],
            out_specs=pl.BlockSpec((tp, d, tn), lambda i, j: (i, 0, j)),
        ),
        compiler_params=pltpu.CompilerParams(
            dimension_semantics=("parallel", "parallel"),
            vmem_limit_bytes=vmem_limit,
        ),
    )(x3)


def l2_normalize(x, *, dim=1, eps=1e-12):
    """torch.nn.functional.normalize(x, p=2, dim=dim, eps=eps) semantics."""
    ndim = x.ndim
    if ndim == 0:
        raise ValueError("l2_normalize requires at least one dimension")
    dim = dim % ndim
    shape = x.shape
    d = int(shape[dim])
    pre = int(math.prod(shape[:dim]))
    post = int(math.prod(shape[dim + 1:]))
    target_bytes, vmem_limit = _budget()

    # TODO(synk): extremely wide norm axes (a single (8, D) block + f32 temps
    # exceeding the VMEM limit) would need a D-chunked two-pass fallback.

    if post == 1:
        # Normalization axis is (effectively) the last one: (N, D) row layouts.
        n = pre
        x2 = x.reshape(n, d)                                  # free reshape
        if d >= 128:
            out = _call_rows(x2, eps, target_bytes, vmem_limit)
        elif d > 0 and 128 % d == 0 and (n * d) % 128 == 0 and n * d >= 128:
            k = 128 // d
            out = _call_seg_rows(x2.reshape(n // k, 128), d, eps,
                                 target_bytes, vmem_limit)
            out = out.reshape(n, d)
        else:
            # Small, non-128-divisible D: lane-masked stores but transpose-free.
            out = _call_rows(x2, eps, target_bytes, vmem_limit)
        return out.reshape(shape)

    # Interior dim: view as (pre, D, post) — contiguous reshape, no transpose.
    x3 = x.reshape(pre, d, post)
    out = _call_mid(x3, eps, target_bytes, vmem_limit)
    return out.reshape(shape)


# -----------------------------------------------------------------------------
# Self-test
# -----------------------------------------------------------------------------
if __name__ == "__main__":
    key = jax.random.PRNGKey(0)
    k1, k2, k3, k4, k5 = jax.random.split(key, 5)

    def ref(x, dim, eps=1e-12):
        xf = x.astype(jnp.float32)
        nrm = jnp.sqrt(jnp.sum(xf * xf, axis=dim, keepdims=True))
        return (xf / jnp.maximum(nrm, eps)).astype(x.dtype)

    # 1) GraphSAGE case: (nodes, hidden=64), dim=1 -> segmented MXU path
    #    (128-lane dense, no transpose). MXU segment-sum => slightly looser tol.
    x1 = jax.random.normal(k1, (16, 64), dtype=jnp.float32)
    y1 = l2_normalize(x1, dim=1)
    jax.block_until_ready(y1)
    assert jnp.allclose(y1, ref(x1, 1), atol=1e-4, rtol=1e-4), "seg-row path"

    # 2) Interior dim on a 4-D tensor: (2, 4, 16, 16), dim=1 -> 3-D mid path.
    x2 = jax.random.normal(k2, (2, 4, 16, 16), dtype=jnp.float32)
    y2 = l2_normalize(x2, dim=1)
    jax.block_until_ready(y2)
    assert jnp.allclose(y2, ref(x2, 1), atol=1e-5, rtol=1e-5), "mid path"

    # 3) Wide last-dim row path with a ragged, 2-block (megacore-split) grid.
    x3 = jax.random.normal(k3, (300, 256), dtype=jnp.float32)
    y3 = l2_normalize(x3, dim=1)
    jax.block_until_ready(y3)
    assert jnp.allclose(y3, ref(x3, 1), atol=1e-5, rtol=1e-5), "row path"

    # 4) bf16 in / bf16 out, dim=0 -> mid path with pre=1 (f32 accumulation).
    x4 = jax.random.normal(k4, (48, 160), dtype=jnp.float32).astype(jnp.bfloat16)
    y4 = l2_normalize(x4, dim=0)
    jax.block_until_ready(y4)
    assert jnp.allclose(y4.astype(jnp.float32), ref(x4, 0).astype(jnp.float32),
                        atol=2e-2, rtol=2e-2), "bf16 mid path"

    # 5) Small non-128-divisible last dim -> plain row fallback (masked stores).
    x5 = jax.random.normal(k5, (9, 48), dtype=jnp.float32)
    y5 = l2_normalize(x5, dim=-1)
    jax.block_until_ready(y5)
    assert jnp.allclose(y5, ref(x5, 1), atol=1e-5, rtol=1e-5), "small-D fallback"

    print("KERNEL_OK")
</pallas_src>

<mosaic_0001>
module attributes {stable_mosaic.version = 11 : i64} {
  func.func @_seg_row_kernel(%arg0: i32, %arg1: memref<8x128xf32, #tpu.memory_space<vmem>>, %arg2: memref<128x128xbf16, #tpu.memory_space<vmem>>, %arg3: memref<8x128xf32, #tpu.memory_space<vmem>>) attributes {dimension_semantics = [#tpu.dimension_semantics<parallel>], iteration_bounds = array<i64: 1>, scalar_prefetch = 0 : i64, scratch_operands = 0 : i64, tpu.core_type = #tpu.core_type<tc>, window_params = [{transform_indices = @transform_0, window_bounds = array<i64: 8, 128>}, {pipeline_mode = #tpu.pipeline_mode<synchronous>, transform_indices = @transform_1, window_bounds = array<i64: 128, 128>}, {transform_indices = @transform_2, window_bounds = array<i64: 8, 128>}]} {
    %c0 = arith.constant 0 : index
    %c0_0 = arith.constant 0 : index
    %0 = vector.load %arg1[%c0, %c0_0] : memref<8x128xf32, #tpu.memory_space<vmem>>, vector<8x128xf32>
    %1 = arith.mulf %0, %0 : vector<8x128xf32>
    %2 = arith.truncf %1 : vector<8x128xf32> to vector<8x128xbf16>
    %3 = arith.extf %2 : vector<8x128xbf16> to vector<8x128xf32>
    %4 = arith.subf %1, %3 : vector<8x128xf32>
    %5 = arith.truncf %4 : vector<8x128xf32> to vector<8x128xbf16>
    %c0_1 = arith.constant 0 : index
    %c0_2 = arith.constant 0 : index
    %6 = vector.load %arg2[%c0_1, %c0_2] : memref<128x128xbf16, #tpu.memory_space<vmem>>, vector<128x128xbf16>
    %cst = arith.constant dense<0.000000e+00> : vector<8x128xf32>
    %7 = tpu.matmul %2, %6, %cst {dimension_numbers = #tpu.dot_dimension_numbers<[1], [0], [0], [1], [0, 0, 1, 1], [], []>} : vector<8x128xbf16>, vector<128x128xbf16>, vector<8x128xf32> -> vector<8x128xf32>
    %cst_3 = arith.constant dense<0.000000e+00> : vector<8x128xf32>
    %8 = tpu.matmul %5, %6, %cst_3 {dimension_numbers = #tpu.dot_dimension_numbers<[1], [0], [0], [1], [0, 0, 1, 1], [], []>} : vector<8x128xbf16>, vector<128x128xbf16>, vector<8x128xf32> -> vector<8x128xf32>
    %9 = arith.addf %7, %8 : vector<8x128xf32>
    %cst_4 = arith.constant 1.000000e-24 : f32
    %10 = vector.broadcast %cst_4 : f32 to vector<8x128xf32>
    %11 = arith.maximumf %9, %10 : vector<8x128xf32>
    %12 = math.rsqrt %11 : vector<8x128xf32>
    %13 = arith.mulf %0, %12 : vector<8x128xf32>
    %c0_5 = arith.constant 0 : index
    %c0_6 = arith.constant 0 : index
    %14 = vector.load %arg3[%c0_5, %c0_6] : memref<8x128xf32, #tpu.memory_space<vmem>>, vector<8x128xf32>
    tpu.vector_store %arg3[%c0_5, %c0_6], %13 {strides = array<i32>} : memref<8x128xf32, #tpu.memory_space<vmem>>, vector<8x128xf32>,
    return
  }
  func.func @transform_0(%arg0: i32) -> (i32, i32) {
    %c0_i32 = arith.constant 0 : i32
    %c0_i32_0 = arith.constant 0 : i32
    return %arg0, %c0_i32 : i32, i32
  }
  func.func @transform_1(%arg0: i32) -> (i32, i32) {
    %c0_i32 = arith.constant 0 : i32
    %c0_i32_0 = arith.constant 0 : i32
    %c0_i32_1 = arith.constant 0 : i32
    return %c0_i32, %c0_i32_0 : i32, i32
  }
  func.func @transform_2(%arg0: i32) -> (i32, i32) {
    %c0_i32 = arith.constant 0 : i32
    %c0_i32_0 = arith.constant 0 : i32
    return %arg0, %c0_i32 : i32, i32
  }
}

</mosaic_0001>

<bundles_post_ra>
// kernel: tpu_custom_call.1
= control target key start
LH: loop header
LB: loop body
LE: loop exit
PB: predicated region body
PF: predicated region fallthrough
CT: control target
= control target key end

     0   :  { %7 = vsyncpa [#allocation3], 0  ;;  %s430_s0 = inlined_call_operand.hbm [shape: f32[8,128], index: 0, kind: input, shape index: {}]   ;;  %s431_s1 = inlined_call_operand.hbm [shape: bf16[128,128], index: 1, kind: input, shape index: {}]   ;;  %s432_s2 = inlined_call_operand.hbm [shape: f32[8,128], index: 2, kind: output, shape index: {}]  }
   0x1   :  { %8 = vsyncpa [#allocation6], 0 }
   0x2   :  { %9 = vsyncpa [#allocation4], 0  ;;  %s365_s9 = smov [#allocation2]   ;;  %s366_s11 = smov [#allocation5]  }
   0x3   :  { %s16_s10 = sshll.u32 %s365_s9, 4  ;;  %s25_s12 = sshll.u32 %s366_s11, 4  ;;  %s17_s10 = int_to_ptr.vmem [resolvable:$true] %s16_s10  ;;  %s387_s12 = int_to_ptr.vmem [resolvable:$true] %s25_s12 }
   0x4   :  { %s293_s15 = scalar_lea.hbm %s430_s0, 128 }
   0x5   :  { %p294_p0 = scmp.ne.s32.totalorder %s430_s0, %s293_s15  ;;  %p297_p1 = scmp.lt.u32.totalorder %s293_s15, %s430_s0 }
   0x7   :  { %p299_p2 = pnand %p297_p1, %p294_p0 }
   0x9   :  { %302 = shalt.err (!%p299_p2)
}
   0xa   :  { %s303_s20 = scalar_lea.vmem %s17_s10, 128  ;;  %p308_p4 = scmp.lt.s32.totalorder %s17_s10, %s17_s10 }
   0xb   :  { %p304_p3 = scmp.ne.s32.totalorder %s17_s10, %s303_s20  ;;  %p309_p5 = scmp.lt.s32.totalorder %s303_s20, %s303_s20 }
   0xd   :  { %p310_p6 = por %p309_p5, %p308_p4 }
   0xf   :  { %p311_p7 = pnand %p310_p6, %p304_p3 }
  0x11   :  { %314 = shalt.err (!%p311_p7)
}
  0x12   :  { %19 = dma.hbm_to_vmem [thread:$0]  %s430_s0, 128, %s17_s10, [#allocation3]  }
  0x13   :  { %s315_s25 = scalar_lea.hbm %s431_s1, 1024 }
  0x14   :  { %p316_p8 = scmp.ne.s32.totalorder %s431_s1, %s315_s25  ;;  %p319_p9 = scmp.lt.u32.totalorder %s315_s25, %s431_s1 }
  0x16   :  { %p321_p10 = pnand %p319_p9, %p316_p8 }
  0x18   :  { %324 = shalt.err (!%p321_p10)
}
  0x19   :  { %s325_s30 = scalar_lea.vmem %s387_s12, 1024  ;;  %p330_p12 = scmp.lt.s32.totalorder %s387_s12, %s387_s12 }
  0x1a   :  { %p326_p11 = scmp.ne.s32.totalorder %s387_s12, %s325_s30  ;;  %p331_p13 = scmp.lt.s32.totalorder %s325_s30, %s325_s30 }
  0x1c   :  { %p332_p0 = por %p331_p13, %p330_p12 }
  0x1e   :  { %p333_p1 = pnand %p332_p0, %p326_p11 }
  0x20   :  { %336 = shalt.err (!%p333_p1)
}
  0x21   :  { %s367_s0 = smov 64   ;;  %s368_s3 = smov 4  }
  0x22   :  { %31 = dma.hbm_to_vmem [thread:$0]  %s431_s1, 1024, %s387_s12, [#allocation6], %s367_s0, %s367_s0, %s368_s3  }
  0x23   :  { %359 = dma.done.wait [#allocation3], 128  }
  0x24   :  { %360 = vsyncadd [#allocation3], 4294967168 }
  0x25   :  { %361 = dma.done.wait [#allocation6], 1024  }
  0x26   :  { %362 = vsyncadd [#allocation6], 4294966272  ;;  %v369_v0 = vmov 0.0   ;;  %vm370_vm0 = vmmov 0   ;;  %v283_v1 = vld [vmem:[#allocation5] sm:$0xff]   ;;  %v284_v2 = vld [vmem:[#allocation5 + $0x8] sm:$0xff]  }
  0x27   :  { %235 = vmatprep.subr.bf16.mxu1 %v369_v0  ;;  %255 = vmatprep.subr.bf16.mxu0 %v369_v0  ;;  %v285_v3 = vld [vmem:[#allocation5 + $0x10] sm:$0xff]   ;;  %v286_v4 = vld [vmem:[#allocation5 + $0x18] sm:$0xff]   ;;  %v287_v7 = vld [vmem:[#allocation5 + $0x20] sm:$0xff]   ;;  %s371_s1 = smov [#allocation7]  }
  0x28   :  { %251 = vmatprep.mubr.msk.bf16.mxu1 %vm370_vm0, %v369_v0  ;;  %271 = vmatprep.mubr.msk.bf16.mxu0 %vm370_vm0, %v369_v0  ;;  %v39_v5 = vld [vmem:[#allocation2] sm:$0xff]  ;;  %v288_v9 = vld [vmem:[#allocation5 + $0x28] sm:$0xff]   ;;  %v289_v11 = vld [vmem:[#allocation5 + $0x30] sm:$0xff]   ;;  %s199_s6 = sshll.u32 %s371_s1, 4  ;;  %s200_s6 = int_to_ptr.vmem [resolvable:$true] %s199_s6 }
  0x29   :  { %236 = vmatpush3.bf16.msra.mxu1 %v283_v1  ;;  %256 = vmatpush3.bf16.msra.mxu0 %v283_v1  ;;  %v40_v6 = vmul.f32 %v39_v5, %v39_v5  ;;  %v290_v13 = vld [vmem:[#allocation5 + $0x38] sm:$0xff]   ;;  %s337_s7 = scalar_lea.vmem %s200_s6, 128  ;;  %p342_p3 = scmp.lt.s32.totalorder %s200_s6, %s200_s6 }
  0x2a   :  { %237 = vmatprep.subr.bf16.mxu1 %v369_v0  ;;  %257 = vmatprep.subr.bf16.mxu0 %v369_v0  ;;  %p338_p2 = scmp.ne.s32.totalorder %s200_s6, %s337_s7  ;;  %p343_p4 = scmp.lt.s32.totalorder %s337_s7, %s337_s7 }
  0x2b   :  { %v41_v8 = vpack.c.bf16 %v40_v6, %v40_v6 }
  0x2c   :  { %p344_p5 = por %p343_p4, %p342_p3 }
  0x2d   :  { %238 = vmatpush3.bf16.msra.mxu1 %v284_v2  ;;  %258 = vmatpush3.bf16.msra.mxu0 %v284_v2  ;;  %v42_v10 = vunpack.c.l.bf16 %v41_v8 }
  0x2e   :  { %239 = vmatprep.subr.bf16.mxu1 %v369_v0  ;;  %259 = vmatprep.subr.bf16.mxu0 %v369_v0  ;;  %p345_p6 = pnand %p344_p5, %p338_p2 }
  0x2f   :  { %v43_v12 = vsub.f32 %v40_v6, %v42_v10 }
  0x31   :  { %240 = vmatpush3.bf16.msra.mxu1 %v285_v3  ;;  %260 = vmatpush3.bf16.msra.mxu0 %v285_v3  ;;  %v44_v14 = vpack.c.bf16 %v43_v12, %v43_v12 }
  0x32   :  { %241 = vmatprep.subr.bf16.mxu1 %v369_v0  ;;  %261 = vmatprep.subr.bf16.mxu0 %v369_v0 }
  0x35   :  { %242 = vmatpush3.bf16.msra.mxu1 %v286_v4  ;;  %262 = vmatpush3.bf16.msra.mxu0 %v286_v4 }
  0x36   :  { %243 = vmatprep.subr.bf16.mxu1 %v369_v0  ;;  %263 = vmatprep.subr.bf16.mxu0 %v369_v0 }
  0x39   :  { %244 = vmatpush3.bf16.msra.mxu1 %v287_v7  ;;  %264 = vmatpush3.bf16.msra.mxu0 %v287_v7 }
  0x3a   :  { %245 = vmatprep.subr.bf16.mxu1 %v369_v0  ;;  %265 = vmatprep.subr.bf16.mxu0 %v369_v0 }
  0x3d   :  { %246 = vmatpush3.bf16.msra.mxu1 %v288_v9  ;;  %266 = vmatpush3.bf16.msra.mxu0 %v288_v9 }
  0x3e   :  { %247 = vmatprep.subr.bf16.mxu1 %v369_v0  ;;  %267 = vmatprep.subr.bf16.mxu0 %v369_v0 }
  0x41   :  { %248 = vmatpush3.bf16.msra.mxu1 %v289_v11  ;;  %268 = vmatpush3.bf16.msra.mxu0 %v289_v11 }
  0x42   :  { %249 = vmatprep.subr.bf16.mxu1 %v369_v0  ;;  %269 = vmatprep.subr.bf16.mxu0 %v369_v0 }
  0x45   :  { %250 = vmatpush3.bf16.msra.mxu1 %v290_v13  ;;  %270 = vmatpush3.bf16.msra.mxu0 %v290_v13 }
  0x48   :  { %252 = vmatmul.mubr.bf16.vlgmr.msra.gmra.mrb[0].mxu1 %v44_v14  ;;  %272 = vmatmul.mubr.bf16.vlgmr.msra.gmra.mrb[0].mxu0 %v41_v8 }
 0x11b   :  { %v143_v15 = vpop.f32.mrb[0].mxu1  ;;  %v183_v16 = vpop.f32.mrb[0].mxu0 }
 0x11c   :  { %v184_v17 = vadd.f32 %v183_v16, %v143_v15  ;;  %v253_v18 = vpop.f32.mrb[1].mxu1  ;;  %v273_v19 = vpop.f32.mrb[1].mxu0 }
 0x11d   :  { %v146_v20 = vpop.f32.mrb[2].mxu1  ;;  %v186_v21 = vpop.f32.mrb[2].mxu0 }
 0x11e   :  { %v189_v22 = vmax.f32 %v184_v17, 1e-24  ;;  %v254_v23 = vpop.f32.mrb[3].mxu1  ;;  %v274_v24 = vpop.f32.mrb[3].mxu0 }
 0x120   :  { %291 = vrsqrt.f32 %v189_v22 }
 0x12a   :  { %v292_v25 = vpop.eup %291 }
 0x12b   :  { %v191_v26 = vmul.f32 %v292_v25, %v39_v5 }
 0x12d   :  { %192 = vst [vmem:[#allocation7] sm:$0xff] %v191_v26 }
 0x12e   :  { %348 = shalt.err (!%p345_p6)
}
 0x12f   :  { %s349_s10 = scalar_lea.hbm %s432_s2, 128 }
 0x130   :  { %p350_p7 = scmp.ne.s32.totalorder %s432_s2, %s349_s10  ;;  %p353_p8 = scmp.lt.u32.totalorder %s349_s10, %s432_s2 }
 0x132   :  { %p355_p9 = pnand %p353_p8, %p350_p7 }
 0x134   :  { %358 = shalt.err (!%p355_p9)
}
 0x135   :  { %202 = dma.vmem_to_hbm [thread:$0]  %s200_s6, 128, %s432_s2, [#allocation4]  }
 0x136   :  { %363 = dma.done.wait [#allocation4], 128  }
 0x137   :  { %364 = vsyncadd [#allocation4], 4294967168 }
 0x138   :  { %206 = vsyncpa [#allocation3], 1 }
 0x139   :  { %207 = vsyncpa [#allocation6], 1 }
 0x13a   :  { %208 = vsyncpa [#allocation4], 1 }

</bundles_post_ra>
